<compile_context>
chip_gen: v6e
topology: v6e:2x2x1
jax: 0.10.0
libtpu: 0.0.40
codegen_flags: <defaults>
</compile_context>

<pallas_src>
import functools

import jax
import jax.numpy as jnp
import numpy as np
from jax.experimental import pallas as pl
from jax.experimental.pallas import tpu as pltpu

_LANE = 128

_ACTS = {
    "Tanh": jnp.tanh,
    "ReLU": lambda v: jnp.maximum(v, 0.0),
    "Sigmoid": jax.nn.sigmoid,
    "LogSigmoid": jax.nn.log_sigmoid,
}


def _round_up(a, b):
    return ((a + b - 1) // b) * b


# --------------------------------------------------------------------------- #
# Kernel
# --------------------------------------------------------------------------- #
def _dgm_kernel(x_ref, s_ref, wx_ref, ws_ref, whs_ref, b_ref, out_ref, *,
                activation, dim_sp, dim_s, mm_dtype):
    """One batch tile of the DGM gated layer.

    Packed weight layout (gate column order R | Z | G | H, each gate's output
    axis zero-padded to dim_sp = round_up(dim_S, 128)):
        wx_ref : [dim_x, 4*dim_sp]   x-side weights of R,Z,G,H
        ws_ref : [dim_S, 3*dim_sp]   S-side weights of R,Z,G
        whs_ref: [dim_S,   dim_sp]   (S*R)-side weight of H
        b_ref  : [1,     4*dim_sp]   biases of R,Z,G,H (f32)
    x / S arrive in their original dtype and are cast in VMEM.
    """
    act = _ACTS[activation]
    n = dim_sp

    x = x_ref[...].astype(mm_dtype)                       # [TB, dim_x]
    s_raw = s_ref[...]                                    # [TB, dim_S]
    s_f32 = s_raw.astype(jnp.float32)
    s_mm = s_raw.astype(mm_dtype)

    # Two fused MXU calls; gate columns are 128-aligned so the slices below are
    # aligned vreg slices.  Bias added once to the fused x-side result.
    xw = jnp.dot(x, wx_ref[...], preferred_element_type=jnp.float32) + b_ref[...]
    sw = jnp.dot(s_mm, ws_ref[...], preferred_element_type=jnp.float32)

    # R first: its dependent (S*R) @ WHs matmul starts as early as possible and
    # overlaps with the Z/G EUP/VPU work.
    r = act(xw[:, 0:n] + sw[:, 0:n])
    sr = (s_f32 * r[:, :dim_s]).astype(mm_dtype)
    hw = jnp.dot(sr, whs_ref[...], preferred_element_type=jnp.float32)

    z = act(xw[:, 1 * n:2 * n] + sw[:, 1 * n:2 * n])
    g = act(xw[:, 2 * n:3 * n] + sw[:, 2 * n:3 * n])
    h = act(xw[:, 3 * n:4 * n] + hw)

    # (1 - G) * H + Z * S, written as H - G*H + Z*S.
    h_s = h[:, :dim_s]
    out = h_s - g[:, :dim_s] * h_s + z[:, :dim_s] * s_f32
    out_ref[...] = out.astype(out_ref.dtype)


# --------------------------------------------------------------------------- #
# Host-side weight packing (do once and cache when stacking layers)
# --------------------------------------------------------------------------- #
def pack_dgm_params(params, *, dim_S, matmul_dtype):
    """Fuse per-gate weights/biases, padding each gate's output axis to a
    128-lane multiple.  Gate column order is R | Z | G | H."""
    dim_sp = _round_up(dim_S, _LANE)

    def pad_n(w):  # pad output (N) axis only; K stays at its natural width
        return jnp.pad(w, ((0, 0), (0, dim_sp - w.shape[1])))

    order = "RZGH"
    wx = jnp.concatenate([pad_n(params[f"W{g}x"]) for g in order], axis=1)
    ws = jnp.concatenate([pad_n(params[f"W{g}s"]) for g in "RZG"], axis=1)
    whs = pad_n(params["WHs"])
    b = jnp.concatenate([pad_n(params[f"b{g}"]) for g in order], axis=1)
    mm = jnp.dtype(matmul_dtype)
    return (wx.astype(mm), ws.astype(mm), whs.astype(mm), b.astype(jnp.float32))


# --------------------------------------------------------------------------- #
# Forward wrapper
# --------------------------------------------------------------------------- #
def dgm_layer_forward(x, S, params, *, activation="Tanh", matmul_dtype=None,
                      block_rows=2048, packed=None):
    """Pallas-backed forward of DGM_Layer.

    x: [B, dim_x]   S: [B, dim_S]
    params: per gate g in {Z,G,R,H}:
        f"W{g}x": [dim_x, dim_S], f"W{g}s": [dim_S, dim_S], f"b{g}": [1, dim_S]
    matmul_dtype: None -> auto (bf16 MXU operands for large dim_S, else x.dtype).
    packed: optional output of pack_dgm_params (cache it for stacked layers).
    """
    if activation not in _ACTS:
        raise ValueError(f"Unknown activation function {activation}")
    B, dim_x = x.shape
    B2, dim_S = S.shape
    assert B == B2, "x and S must share the batch dimension"
    dim_sp = _round_up(dim_S, _LANE)

    if matmul_dtype is None:
        # bf16 MXU operands (f32 accumulation, f32 gate math) once the layer is
        # big enough for the weight-DMA / MXU-pass savings to dominate.
        use_bf16 = (x.dtype == jnp.float32) and dim_S >= 512
        mm_dtype = jnp.dtype(jnp.bfloat16 if use_bf16 else x.dtype)
    else:
        mm_dtype = jnp.dtype(matmul_dtype)
    in_bytes = mm_dtype.itemsize
    out_dtype = x.dtype
    out_bytes = jnp.dtype(out_dtype).itemsize

    if packed is None:
        packed = pack_dgm_params(params, dim_S=dim_S, matmul_dtype=mm_dtype)
    wx, ws, whs, b_all = packed

    # --- per-generation VMEM budget & batch-tile selection --------------------
    try:
        vmem_cap = int(pltpu.get_tpu_info().vmem_capacity_bytes)
    except Exception:
        vmem_cap = 64 * 1024 * 1024          # conservative fallback (v7x per-core)
    vmem_limit = min((vmem_cap * 3) // 4, 100 * 1024 * 1024)  # 48 MiB v7x / 96 MiB v5e,v6e

    weight_bytes = (wx.size + ws.size + whs.size) * in_bytes + b_all.size * 4
    x_bytes = jnp.dtype(x.dtype).itemsize
    s_bytes = jnp.dtype(S.dtype).itemsize
    row_bytes = (2 * dim_x * x_bytes + 2 * dim_S * s_bytes + 2 * dim_S * out_bytes  # pipelined tiles
                 + (dim_x + 2 * dim_S) * in_bytes                                   # in-VMEM casts
                 + (13 * dim_sp + 3 * dim_S) * 4)                                   # f32 intermediates
    # Budget with 2x weights (covers the double-buffer fallback) + scratch headroom.
    budget = max(vmem_limit - 2 * weight_bytes - 6 * 1024 * 1024, 2 * 1024 * 1024)

    sub = 16 if (in_bytes == 2 and B >= 16) else 8          # bf16 sublane tile is 16 rows
    if B <= 128:
        tb = _round_up(B, sub)
    else:
        tb = min(block_rows, budget // row_bytes)
        tb = max(128, (tb // 128) * 128)                      # MXU-friendly multiple of 128
        tb = min(tb, _round_up(B, 128))
    grid = (pl.cdiv(B, tb),)

    mm_flops = 2 * B * dim_sp * (4 * dim_x + 3 * dim_S + dim_S)
    cost = pl.CostEstimate(
        flops=int(mm_flops + 10 * B * dim_S),
        transcendentals=0 if activation == "ReLU" else int(4 * B * dim_sp),
        bytes_accessed=int(x.size * x_bytes + S.size * s_bytes
                           + B * dim_S * out_bytes + weight_bytes),
    )

    kernel = functools.partial(_dgm_kernel, activation=activation,
                               dim_sp=dim_sp, dim_s=dim_S, mm_dtype=mm_dtype)

    def build(single_buffer_weights):
        # Weights/bias have constant index maps -> VMEM-resident; single-buffer
        # them so they don't double their footprint for nothing.
        wkw = {"pipeline_mode": pl.Buffered(1)} if single_buffer_weights else {}
        return pl.pallas_call(
            kernel,
            out_shape=jax.ShapeDtypeStruct((B, dim_S), out_dtype),
            grid_spec=pltpu.PrefetchScalarGridSpec(
                num_scalar_prefetch=0,
                grid=grid,
                in_specs=[
                    pl.BlockSpec((tb, dim_x), lambda i: (i, 0)),                 # x tile
                    pl.BlockSpec((tb, dim_S), lambda i: (i, 0)),                 # S tile
                    pl.BlockSpec((dim_x, 4 * dim_sp), lambda i: (0, 0), **wkw),  # Wx (resident)
                    pl.BlockSpec((dim_S, 3 * dim_sp), lambda i: (0, 0), **wkw),  # Ws RZG (resident)
                    pl.BlockSpec((dim_S, dim_sp), lambda i: (0, 0), **wkw),      # WHs (resident)
                    pl.BlockSpec((1, 4 * dim_sp), lambda i: (0, 0), **wkw),      # bias (resident)
                ],
                out_specs=pl.BlockSpec((tb, dim_S), lambda i: (i, 0)),
            ),
            compiler_params=pltpu.CompilerParams(
                # "parallel" lets Mosaic shard the batch grid across TensorCores
                # on multi-TC parts (v7x); it is a plain pipelined loop elsewhere.
                # If profiling shows the second v7x core idle, pltpu.CORE_PARALLEL
                # is the alternative.
                dimension_semantics=("parallel",),
                vmem_limit_bytes=int(vmem_limit),
            ),
            cost_estimate=cost,
        )

    try:
        out = jax.block_until_ready(build(True)(x, S, wx, ws, whs, b_all))
    except Exception:
        # Fallback if this JAX build rejects single-buffered (Buffered(1)) specs.
        out = build(False)(x, S, wx, ws, whs, b_all)
    return out


# --------------------------------------------------------------------------- #
# Parameter init (mimics nn.Linear default U(-1/sqrt(nIn), 1/sqrt(nIn)))
# --------------------------------------------------------------------------- #
def init_dgm_params(key, dim_x, dim_S, dtype=jnp.float32):
    nIn = dim_x + dim_S
    bound = 1.0 / float(np.sqrt(nIn))
    params = {}
    for gate in ("Z", "G", "R", "H"):
        key, kw, kb = jax.random.split(key, 3)
        # PyTorch Linear weight is [nOut, nIn]; store transposed [nIn, nOut] and
        # split into the x-part and the S-part (H's S-part multiplies S*R).
        w = jax.random.uniform(kw, (nIn, dim_S), dtype, -bound, bound)
        b = jax.random.uniform(kb, (1, dim_S), dtype, -bound, bound)
        params[f"W{gate}x"] = w[:dim_x, :]
        params[f"W{gate}s"] = w[dim_x:, :]
        params[f"b{gate}"] = b
    return params


# --------------------------------------------------------------------------- #
# float64 numpy reference (host-side, independent of TPU matmul precision)
# --------------------------------------------------------------------------- #
def _np_reference(x, S, params, activation="Tanh"):
    acts = {
        "Tanh": np.tanh,
        "ReLU": lambda v: np.maximum(v, 0.0),
        "Sigmoid": lambda v: 1.0 / (1.0 + np.exp(-v)),
        "LogSigmoid": lambda v: -np.logaddexp(0.0, -v),
    }
    f = acts[activation]
    x = np.asarray(x, np.float64)
    S = np.asarray(S, np.float64)
    p = {k: np.asarray(v, np.float64) for k, v in params.items()}

    def gate(ax, as_, g):
        return f(ax @ p[f"W{g}x"] + as_ @ p[f"W{g}s"] + p[f"b{g}"])

    Z = gate(x, S, "Z")
    G = gate(x, S, "G")
    R = gate(x, S, "R")
    H = gate(x, S * R, "H")
    return (1.0 - G) * H + Z * S


if __name__ == "__main__":
    # ---- config 1: small shapes, f32, Tanh -----------------------------------
    B, dim_x, dim_S = 8, 16, 32
    key = jax.random.PRNGKey(0)
    kx, ks, kp = jax.random.split(key, 3)
    x = jax.random.normal(kx, (B, dim_x), jnp.float32)
    S = jax.random.normal(ks, (B, dim_S), jnp.float32)
    params = init_dgm_params(kp, dim_x, dim_S)

    ref = _np_reference(x, S, params, activation="Tanh")
    out = jax.block_until_ready(dgm_layer_forward(x, S, params, activation="Tanh"))
    assert out.shape == (B, dim_S)
    # Tolerance covers any TPU f32-matmul precision mode; structural errors are O(1).
    assert float(np.max(np.abs(np.asarray(out, np.float64) - ref))) < 5e-3, \
        "f32 mismatch vs reference"

    # bf16 MXU operands (f32 accumulation / gate math) — loose tolerance.
    out_bf16 = jax.block_until_ready(
        dgm_layer_forward(x, S, params, activation="Tanh",
                          matmul_dtype=jnp.bfloat16))
    assert out_bf16.shape == (B, dim_S)
    assert float(np.max(np.abs(np.asarray(out_bf16, np.float64) - ref))) < 1.5e-1, \
        "bf16 mismatch vs reference"

    # ---- config 2: ragged batch, non-lane-multiple features, Sigmoid ---------
    B2, dx2, ds2 = 200, 7, 48
    k1, k2, k3 = jax.random.split(jax.random.PRNGKey(1), 3)
    x2 = jax.random.normal(k1, (B2, dx2), jnp.float32)
    S2 = jax.random.normal(k2, (B2, ds2), jnp.float32)
    p2 = init_dgm_params(k3, dx2, ds2)
    ref2 = _np_reference(x2, S2, p2, activation="Sigmoid")
    out2 = jax.block_until_ready(
        dgm_layer_forward(x2, S2, p2, activation="Sigmoid"))
    assert out2.shape == (B2, ds2)
    assert float(np.max(np.abs(np.asarray(out2, np.float64) - ref2))) < 5e-3, \
        "ragged/padded mismatch vs reference"

    print("KERNEL_OK")
</pallas_src>

<mosaic_0001>
module attributes {stable_mosaic.version = 11 : i64} {
  func.func @_dgm_kernel(%arg0: i32, %arg1: memref<8x16xf32, #tpu.memory_space<vmem>>, %arg2: memref<8x32xf32, #tpu.memory_space<vmem>>, %arg3: memref<16x512xf32, #tpu.memory_space<vmem>>, %arg4: memref<32x384xf32, #tpu.memory_space<vmem>>, %arg5: memref<32x128xf32, #tpu.memory_space<vmem>>, %arg6: memref<1x512xf32, #tpu.memory_space<vmem>>, %arg7: memref<8x32xf32, #tpu.memory_space<vmem>>) attributes {dimension_semantics = [#tpu.dimension_semantics<parallel>], iteration_bounds = array<i64: 1>, scalar_prefetch = 0 : i64, scratch_operands = 0 : i64, tpu.core_type = #tpu.core_type<tc>, window_params = [{transform_indices = @transform_0, window_bounds = array<i64: 8, 16>}, {transform_indices = @transform_1, window_bounds = array<i64: 8, 32>}, {pipeline_mode = #tpu.pipeline_mode<synchronous>, transform_indices = @transform_2, window_bounds = array<i64: 16, 512>}, {pipeline_mode = #tpu.pipeline_mode<synchronous>, transform_indices = @transform_3, window_bounds = array<i64: 32, 384>}, {pipeline_mode = #tpu.pipeline_mode<synchronous>, transform_indices = @transform_4, window_bounds = array<i64: 32, 128>}, {pipeline_mode = #tpu.pipeline_mode<synchronous>, transform_indices = @transform_5, window_bounds = array<i64: 1, 512>}, {transform_indices = @transform_6, window_bounds = array<i64: 8, 32>}]} {
    %c0 = arith.constant 0 : index
    %c0_0 = arith.constant 0 : index
    %0 = vector.load %arg1[%c0, %c0_0] : memref<8x16xf32, #tpu.memory_space<vmem>>, vector<8x16xf32>
    %c0_1 = arith.constant 0 : index
    %c0_2 = arith.constant 0 : index
    %1 = vector.load %arg2[%c0_1, %c0_2] : memref<8x32xf32, #tpu.memory_space<vmem>>, vector<8x32xf32>
    %c0_3 = arith.constant 0 : index
    %c0_4 = arith.constant 0 : index
    %2 = vector.load %arg3[%c0_3, %c0_4] : memref<16x512xf32, #tpu.memory_space<vmem>>, vector<16x512xf32>
    %cst = arith.constant dense<0.000000e+00> : vector<8x512xf32>
    %3 = tpu.matmul %0, %2, %cst {dimension_numbers = #tpu.dot_dimension_numbers<[1], [0], [0], [1], [0, 0, 1, 1], [], []>} : vector<8x16xf32>, vector<16x512xf32>, vector<8x512xf32> -> vector<8x512xf32>
    %c0_5 = arith.constant 0 : index
    %c0_6 = arith.constant 0 : index
    %4 = vector.load %arg6[%c0_5, %c0_6] : memref<1x512xf32, #tpu.memory_space<vmem>>, vector<1x512xf32>
    %5 = vector.broadcast %4 : vector<1x512xf32> to vector<8x512xf32>
    %6 = arith.addf %3, %5 : vector<8x512xf32>
    %c0_7 = arith.constant 0 : index
    %c0_8 = arith.constant 0 : index
    %7 = vector.load %arg4[%c0_7, %c0_8] : memref<32x384xf32, #tpu.memory_space<vmem>>, vector<32x384xf32>
    %cst_9 = arith.constant dense<0.000000e+00> : vector<8x384xf32>
    %8 = tpu.matmul %1, %7, %cst_9 {dimension_numbers = #tpu.dot_dimension_numbers<[1], [0], [0], [1], [0, 0, 1, 1], [], []>} : vector<8x32xf32>, vector<32x384xf32>, vector<8x384xf32> -> vector<8x384xf32>
    %9 = vector.extract_strided_slice %6 {offsets = [0, 0], sizes = [8, 128], strides = [1, 1]} : vector<8x512xf32> to vector<8x128xf32>
    %10 = vector.extract_strided_slice %8 {offsets = [0, 0], sizes = [8, 128], strides = [1, 1]} : vector<8x384xf32> to vector<8x128xf32>
    %11 = arith.addf %9, %10 : vector<8x128xf32>
    %12 = math.tanh %11 : vector<8x128xf32>
    %13 = vector.extract_strided_slice %12 {offsets = [0, 0], sizes = [8, 32], strides = [1, 1]} : vector<8x128xf32> to vector<8x32xf32>
    %14 = arith.mulf %1, %13 : vector<8x32xf32>
    %c0_10 = arith.constant 0 : index
    %c0_11 = arith.constant 0 : index
    %15 = vector.load %arg5[%c0_10, %c0_11] : memref<32x128xf32, #tpu.memory_space<vmem>>, vector<32x128xf32>
    %cst_12 = arith.constant dense<0.000000e+00> : vector<8x128xf32>
    %16 = tpu.matmul %14, %15, %cst_12 {dimension_numbers = #tpu.dot_dimension_numbers<[1], [0], [0], [1], [0, 0, 1, 1], [], []>} : vector<8x32xf32>, vector<32x128xf32>, vector<8x128xf32> -> vector<8x128xf32>
    %17 = vector.extract_strided_slice %6 {offsets = [0, 128], sizes = [8, 128], strides = [1, 1]} : vector<8x512xf32> to vector<8x128xf32>
    %18 = vector.extract_strided_slice %8 {offsets = [0, 128], sizes = [8, 128], strides = [1, 1]} : vector<8x384xf32> to vector<8x128xf32>
    %19 = arith.addf %17, %18 : vector<8x128xf32>
    %20 = math.tanh %19 : vector<8x128xf32>
    %21 = vector.extract_strided_slice %6 {offsets = [0, 256], sizes = [8, 128], strides = [1, 1]} : vector<8x512xf32> to vector<8x128xf32>
    %22 = vector.extract_strided_slice %8 {offsets = [0, 256], sizes = [8, 128], strides = [1, 1]} : vector<8x384xf32> to vector<8x128xf32>
    %23 = arith.addf %21, %22 : vector<8x128xf32>
    %24 = math.tanh %23 : vector<8x128xf32>
    %25 = vector.extract_strided_slice %6 {offsets = [0, 384], sizes = [8, 128], strides = [1, 1]} : vector<8x512xf32> to vector<8x128xf32>
    %26 = arith.addf %25, %16 : vector<8x128xf32>
    %27 = math.tanh %26 : vector<8x128xf32>
    %28 = vector.extract_strided_slice %27 {offsets = [0, 0], sizes = [8, 32], strides = [1, 1]} : vector<8x128xf32> to vector<8x32xf32>
    %29 = vector.extract_strided_slice %24 {offsets = [0, 0], sizes = [8, 32], strides = [1, 1]} : vector<8x128xf32> to vector<8x32xf32>
    %30 = arith.mulf %29, %28 : vector<8x32xf32>
    %31 = arith.subf %28, %30 : vector<8x32xf32>
    %32 = vector.extract_strided_slice %20 {offsets = [0, 0], sizes = [8, 32], strides = [1, 1]} : vector<8x128xf32> to vector<8x32xf32>
    %33 = arith.mulf %32, %1 : vector<8x32xf32>
    %34 = arith.addf %31, %33 : vector<8x32xf32>
    %c0_13 = arith.constant 0 : index
    %c0_14 = arith.constant 0 : index
    %35 = vector.load %arg7[%c0_13, %c0_14] : memref<8x32xf32, #tpu.memory_space<vmem>>, vector<8x32xf32>
    tpu.vector_store %arg7[%c0_13, %c0_14], %34 {strides = array<i32>} : memref<8x32xf32, #tpu.memory_space<vmem>>, vector<8x32xf32>,
    return
  }
  func.func @transform_0(%arg0: i32) -> (i32, i32) {
    %c0_i32 = arith.constant 0 : i32
    %c0_i32_0 = arith.constant 0 : i32
    return %arg0, %c0_i32 : i32, i32
  }
  func.func @transform_1(%arg0: i32) -> (i32, i32) {
    %c0_i32 = arith.constant 0 : i32
    %c0_i32_0 = arith.constant 0 : i32
    return %arg0, %c0_i32 : i32, i32
  }
  func.func @transform_2(%arg0: i32) -> (i32, i32) {
    %c0_i32 = arith.constant 0 : i32
    %c0_i32_0 = arith.constant 0 : i32
    %c0_i32_1 = arith.constant 0 : i32
    return %c0_i32, %c0_i32_0 : i32, i32
  }
  func.func @transform_3(%arg0: i32) -> (i32, i32) {
    %c0_i32 = arith.constant 0 : i32
    %c0_i32_0 = arith.constant 0 : i32
    %c0_i32_1 = arith.constant 0 : i32
    return %c0_i32, %c0_i32_0 : i32, i32
  }
  func.func @transform_4(%arg0: i32) -> (i32, i32) {
    %c0_i32 = arith.constant 0 : i32
    %c0_i32_0 = arith.constant 0 : i32
    %c0_i32_1 = arith.constant 0 : i32
    return %c0_i32, %c0_i32_0 : i32, i32
  }
  func.func @transform_5(%arg0: i32) -> (i32, i32) {
    %c0_i32 = arith.constant 0 : i32
    %c0_i32_0 = arith.constant 0 : i32
    %c0_i32_1 = arith.constant 0 : i32
    return %c0_i32, %c0_i32_0 : i32, i32
  }
  func.func @transform_6(%arg0: i32) -> (i32, i32) {
    %c0_i32 = arith.constant 0 : i32
    %c0_i32_0 = arith.constant 0 : i32
    return %arg0, %c0_i32 : i32, i32
  }
}

module attributes {stable_mosaic.version = 11 : i64} {
  func.func @_dgm_kernel(%arg0: i32, %arg1: memref<8x16xf32, #tpu.memory_space<vmem>>, %arg2: memref<8x32xf32, #tpu.memory_space<vmem>>, %arg3: memref<16x512xf32, #tpu.memory_space<vmem>>, %arg4: memref<32x384xf32, #tpu.memory_space<vmem>>, %arg5: memref<32x128xf32, #tpu.memory_space<vmem>>, %arg6: memref<1x512xf32, #tpu.memory_space<vmem>>, %arg7: memref<8x32xf32, #tpu.memory_space<vmem>>) attributes {dimension_semantics = [#tpu.dimension_semantics<parallel>], iteration_bounds = array<i64: 1>, scalar_prefetch = 0 : i64, scratch_operands = 0 : i64, tpu.core_type = #tpu.core_type<tc>, window_params = [{transform_indices = @transform_0, window_bounds = array<i64: 8, 16>}, {transform_indices = @transform_1, window_bounds = array<i64: 8, 32>}, {pipeline_mode = #tpu.pipeline_mode<synchronous>, transform_indices = @transform_2, window_bounds = array<i64: 16, 512>}, {pipeline_mode = #tpu.pipeline_mode<synchronous>, transform_indices = @transform_3, window_bounds = array<i64: 32, 384>}, {pipeline_mode = #tpu.pipeline_mode<synchronous>, transform_indices = @transform_4, window_bounds = array<i64: 32, 128>}, {pipeline_mode = #tpu.pipeline_mode<synchronous>, transform_indices = @transform_5, window_bounds = array<i64: 1, 512>}, {transform_indices = @transform_6, window_bounds = array<i64: 8, 32>}]} {
    %c0 = arith.constant 0 : index
    %c0_0 = arith.constant 0 : index
    %0 = vector.load %arg1[%c0, %c0_0] : memref<8x16xf32, #tpu.memory_space<vmem>>, vector<8x16xf32>
    %c0_1 = arith.constant 0 : index
    %c0_2 = arith.constant 0 : index
    %1 = vector.load %arg2[%c0_1, %c0_2] : memref<8x32xf32, #tpu.memory_space<vmem>>, vector<8x32xf32>
    %c0_3 = arith.constant 0 : index
    %c0_4 = arith.constant 0 : index
    %2 = vector.load %arg3[%c0_3, %c0_4] : memref<16x512xf32, #tpu.memory_space<vmem>>, vector<16x512xf32>
    %cst = arith.constant dense<0.000000e+00> : vector<8x512xf32>
    %3 = tpu.matmul %0, %2, %cst {dimension_numbers = #tpu.dot_dimension_numbers<[1], [0], [0], [1], [0, 0, 1, 1], [], []>} : vector<8x16xf32>, vector<16x512xf32>, vector<8x512xf32> -> vector<8x512xf32>
    %c0_5 = arith.constant 0 : index
    %c0_6 = arith.constant 0 : index
    %4 = vector.load %arg6[%c0_5, %c0_6] : memref<1x512xf32, #tpu.memory_space<vmem>>, vector<1x512xf32>
    %5 = vector.broadcast %4 : vector<1x512xf32> to vector<8x512xf32>
    %6 = arith.addf %3, %5 : vector<8x512xf32>
    %c0_7 = arith.constant 0 : index
    %c0_8 = arith.constant 0 : index
    %7 = vector.load %arg4[%c0_7, %c0_8] : memref<32x384xf32, #tpu.memory_space<vmem>>, vector<32x384xf32>
    %cst_9 = arith.constant dense<0.000000e+00> : vector<8x384xf32>
    %8 = tpu.matmul %1, %7, %cst_9 {dimension_numbers = #tpu.dot_dimension_numbers<[1], [0], [0], [1], [0, 0, 1, 1], [], []>} : vector<8x32xf32>, vector<32x384xf32>, vector<8x384xf32> -> vector<8x384xf32>
    %9 = vector.extract_strided_slice %6 {offsets = [0, 0], sizes = [8, 128], strides = [1, 1]} : vector<8x512xf32> to vector<8x128xf32>
    %10 = vector.extract_strided_slice %8 {offsets = [0, 0], sizes = [8, 128], strides = [1, 1]} : vector<8x384xf32> to vector<8x128xf32>
    %11 = arith.addf %9, %10 : vector<8x128xf32>
    %12 = math.tanh %11 : vector<8x128xf32>
    %13 = vector.extract_strided_slice %12 {offsets = [0, 0], sizes = [8, 32], strides = [1, 1]} : vector<8x128xf32> to vector<8x32xf32>
    %14 = arith.mulf %1, %13 : vector<8x32xf32>
    %c0_10 = arith.constant 0 : index
    %c0_11 = arith.constant 0 : index
    %15 = vector.load %arg5[%c0_10, %c0_11] : memref<32x128xf32, #tpu.memory_space<vmem>>, vector<32x128xf32>
    %cst_12 = arith.constant dense<0.000000e+00> : vector<8x128xf32>
    %16 = tpu.matmul %14, %15, %cst_12 {dimension_numbers = #tpu.dot_dimension_numbers<[1], [0], [0], [1], [0, 0, 1, 1], [], []>} : vector<8x32xf32>, vector<32x128xf32>, vector<8x128xf32> -> vector<8x128xf32>
    %17 = vector.extract_strided_slice %6 {offsets = [0, 128], sizes = [8, 128], strides = [1, 1]} : vector<8x512xf32> to vector<8x128xf32>
    %18 = vector.extract_strided_slice %8 {offsets = [0, 128], sizes = [8, 128], strides = [1, 1]} : vector<8x384xf32> to vector<8x128xf32>
    %19 = arith.addf %17, %18 : vector<8x128xf32>
    %20 = math.tanh %19 : vector<8x128xf32>
    %21 = vector.extract_strided_slice %6 {offsets = [0, 256], sizes = [8, 128], strides = [1, 1]} : vector<8x512xf32> to vector<8x128xf32>
    %22 = vector.extract_strided_slice %8 {offsets = [0, 256], sizes = [8, 128], strides = [1, 1]} : vector<8x384xf32> to vector<8x128xf32>
    %23 = arith.addf %21, %22 : vector<8x128xf32>
    %24 = math.tanh %23 : vector<8x128xf32>
    %25 = vector.extract_strided_slice %6 {offsets = [0, 384], sizes = [8, 128], strides = [1, 1]} : vector<8x512xf32> to vector<8x128xf32>
    %26 = arith.addf %25, %16 : vector<8x128xf32>
    %27 = math.tanh %26 : vector<8x128xf32>
    %28 = vector.extract_strided_slice %27 {offsets = [0, 0], sizes = [8, 32], strides = [1, 1]} : vector<8x128xf32> to vector<8x32xf32>
    %29 = vector.extract_strided_slice %24 {offsets = [0, 0], sizes = [8, 32], strides = [1, 1]} : vector<8x128xf32> to vector<8x32xf32>
    %30 = arith.mulf %29, %28 : vector<8x32xf32>
    %31 = arith.subf %28, %30 : vector<8x32xf32>
    %32 = vector.extract_strided_slice %20 {offsets = [0, 0], sizes = [8, 32], strides = [1, 1]} : vector<8x128xf32> to vector<8x32xf32>
    %33 = arith.mulf %32, %1 : vector<8x32xf32>
    %34 = arith.addf %31, %33 : vector<8x32xf32>
    %c0_13 = arith.constant 0 : index
    %c0_14 = arith.constant 0 : index
    %35 = vector.load %arg7[%c0_13, %c0_14] : memref<8x32xf32, #tpu.memory_space<vmem>>, vector<8x32xf32>
    tpu.vector_store %arg7[%c0_13, %c0_14], %34 {strides = array<i32>} : memref<8x32xf32, #tpu.memory_space<vmem>>, vector<8x32xf32>,
    return
  }
  func.func @transform_0(%arg0: i32) -> (i32, i32) {
    %c0_i32 = arith.constant 0 : i32
    %c0_i32_0 = arith.constant 0 : i32
    return %arg0, %c0_i32 : i32, i32
  }
  func.func @transform_1(%arg0: i32) -> (i32, i32) {
    %c0_i32 = arith.constant 0 : i32
    %c0_i32_0 = arith.constant 0 : i32
    return %arg0, %c0_i32 : i32, i32
  }
  func.func @transform_2(%arg0: i32) -> (i32, i32) {
    %c0_i32 = arith.constant 0 : i32
    %c0_i32_0 = arith.constant 0 : i32
    %c0_i32_1 = arith.constant 0 : i32
    return %c0_i32, %c0_i32_0 : i32, i32
  }
  func.func @transform_3(%arg0: i32) -> (i32, i32) {
    %c0_i32 = arith.constant 0 : i32
    %c0_i32_0 = arith.constant 0 : i32
    %c0_i32_1 = arith.constant 0 : i32
    return %c0_i32, %c0_i32_0 : i32, i32
  }
  func.func @transform_4(%arg0: i32) -> (i32, i32) {
    %c0_i32 = arith.constant 0 : i32
    %c0_i32_0 = arith.constant 0 : i32
    %c0_i32_1 = arith.constant 0 : i32
    return %c0_i32, %c0_i32_0 : i32, i32
  }
  func.func @transform_5(%arg0: i32) -> (i32, i32) {
    %c0_i32 = arith.constant 0 : i32
    %c0_i32_0 = arith.constant 0 : i32
    %c0_i32_1 = arith.constant 0 : i32
    return %c0_i32, %c0_i32_0 : i32, i32
  }
  func.func @transform_6(%arg0: i32) -> (i32, i32) {
    %c0_i32 = arith.constant 0 : i32
    %c0_i32_0 = arith.constant 0 : i32
    return %arg0, %c0_i32 : i32, i32
  }
}

</mosaic_0001>

<bundles_post_ra>
// kernel: tpu_custom_call.1
= control target key start
LH: loop header
LB: loop body
LE: loop exit
PB: predicated region body
PF: predicated region fallthrough
CT: control target
= control target key end

     0   :  { %11 = vsyncpa [#allocation3], 0  ;;  %s815_s0 = inlined_call_operand.hbm [shape: f32[8,16], index: 0, kind: input, shape index: {}]   ;;  %s816_s1 = inlined_call_operand.hbm [shape: f32[8,32], index: 1, kind: input, shape index: {}]   ;;  %s817_s2 = inlined_call_operand.hbm [shape: f32[16,512], index: 2, kind: input, shape index: {}]   ;;  %s818_s3 = inlined_call_operand.hbm [shape: f32[32,384], index: 3, kind: input, shape index: {}]   ;;  %s819_s4 = inlined_call_operand.hbm [shape: f32[32,128], index: 4, kind: input, shape index: {}]   ;;  %s820_s5 = inlined_call_operand.vmem [shape: f32[1,512], index: 5, kind: input, shape index: {}]   ;;  %s821_s6 = inlined_call_operand.hbm [shape: f32[8,32], index: 6, kind: output, shape index: {}]  }
   0x1   :  { %12 = vsyncpa [#allocation6], 0 }
   0x2   :  { %13 = vsyncpa [#allocation9], 0 }
   0x3   :  { %14 = vsyncpa [#allocation4], 0  ;;  %s718_s21 = smov [#allocation5]   ;;  %s719_s23 = smov [#allocation8]  }
   0x4   :  { %s31_s22 = sshll.u32 %s718_s21, 4  ;;  %s52_s24 = sshll.u32 %s719_s23, 4  ;;  %s32_s22 = int_to_ptr.vmem [resolvable:$true] %s31_s22  ;;  %s53_s24 = int_to_ptr.vmem [resolvable:$true] %s52_s24 }
   0x5   :  { %s598_s25 = scalar_lea.vmem %s32_s22, 128  ;;  %p603_p1 = scmp.lt.s32.totalorder %s32_s22, %s32_s22 }
   0x6   :  { %p599_p0 = scmp.ne.s32.totalorder %s32_s22, %s598_s25  ;;  %p604_p2 = scmp.lt.s32.totalorder %s598_s25, %s598_s25 }
   0x8   :  { %p605_p3 = por %p604_p2, %p603_p1 }
   0xa   :  { %p606_p4 = pnand %p605_p3, %p599_p0 }
   0xc   :  { %609 = shalt.err (!%p606_p4)
}
   0xd   :  { %34 = dma.hbm_to_vmem [thread:$0]  %s816_s1, 128, %s32_s22, [#allocation6]  }
   0xe   :  { %s618_s28 = scalar_lea.vmem %s53_s24, 1536  ;;  %p623_p6 = scmp.lt.s32.totalorder %s53_s24, %s53_s24 }
   0xf   :  { %p619_p5 = scmp.ne.s32.totalorder %s53_s24, %s618_s28  ;;  %p624_p7 = scmp.lt.s32.totalorder %s618_s28, %s618_s28 }
  0x11   :  { %p625_p8 = por %p624_p7, %p623_p6 }
  0x13   :  { %p626_p9 = pnand %p625_p8, %p619_p5 }
  0x15   :  { %629 = shalt.err (!%p626_p9)
}
  0x16   :  { %s720_s29 = smov 384   ;;  %s721_s30 = smov 24  }
  0x17   :  { %58 = dma.hbm_to_vmem [thread:$0]  %s818_s3, 1536, %s53_s24, [#allocation9], %s720_s29, %s720_s29, %s721_s30  }
  0x18   :  { %s722_s9 = smov [#allocation2]   ;;  %s723_s11 = smov [#allocation7]  }
  0x19   :  { %s21_s10 = sshll.u32 %s722_s9, 4  ;;  %s40_s12 = sshll.u32 %s723_s11, 4  ;;  %s22_s10 = int_to_ptr.vmem [resolvable:$true] %s21_s10  ;;  %s41_s12 = int_to_ptr.vmem [resolvable:$true] %s40_s12 }
  0x1a   :  { %s638_s1 = scalar_lea.vmem %s22_s10, 128  ;;  %p643_p11 = scmp.lt.s32.totalorder %s22_s10, %s22_s10 }
  0x1b   :  { %p639_p10 = scmp.ne.s32.totalorder %s22_s10, %s638_s1  ;;  %p644_p12 = scmp.lt.s32.totalorder %s638_s1, %s638_s1 }
  0x1d   :  { %p645_p13 = por %p644_p12, %p643_p11 }
  0x1f   :  { %p646_p0 = pnand %p645_p13, %p639_p10 }
  0x21   :  { %649 = shalt.err (!%p646_p0)
}
  0x22   :  { %24 = dma.hbm_to_vmem [thread:$0]  %s815_s0, 128, %s22_s10, [#allocation3]  }
  0x23   :  { %s658_s15 = scalar_lea.vmem %s41_s12, 1024  ;;  %p663_p2 = scmp.lt.s32.totalorder %s41_s12, %s41_s12 }
  0x24   :  { %p659_p1 = scmp.ne.s32.totalorder %s41_s12, %s658_s15  ;;  %p664_p3 = scmp.lt.s32.totalorder %s658_s15, %s658_s15 }
  0x26   :  { %p665_p4 = por %p664_p3, %p663_p2 }
  0x28   :  { %p666_p5 = pnand %p665_p4, %p659_p1 }
  0x2a   :  { %669 = shalt.err (!%p666_p5)
}
  0x2b   :  { %s724_s3 = smov 512   ;;  %s725_s16 = smov 32  }
  0x2c   :  { %46 = dma.hbm_to_vmem [thread:$0]  %s817_s2, 1024, %s41_s12, [#allocation6], %s724_s3, %s724_s3, %s725_s16  }
  0x2d   :  { %s726_s19 = smov [#allocation10]  }
  0x2e   :  { %s64_s20 = sshll.u32 %s726_s19, 4  ;;  %s65_s20 = int_to_ptr.vmem [resolvable:$true] %s64_s20 }
  0x2f   :  { %s678_s21 = scalar_lea.vmem %s65_s20, 512  ;;  %p683_p7 = scmp.lt.s32.totalorder %s65_s20, %s65_s20 }
  0x30   :  { %p679_p6 = scmp.ne.s32.totalorder %s65_s20, %s678_s21  ;;  %p684_p8 = scmp.lt.s32.totalorder %s678_s21, %s678_s21 }
  0x32   :  { %p685_p9 = por %p684_p8, %p683_p7 }
  0x34   :  { %p686_p10 = pnand %p685_p9, %p679_p6 }
  0x36   :  { %689 = shalt.err (!%p686_p10)
}
  0x37   :  { %s727_s0 = smov 128   ;;  %s728_s22 = smov 8  }
  0x38   :  { %70 = dma.hbm_to_vmem [thread:$0]  %s819_s4, 512, %s65_s20, [#allocation9], %s727_s0, %s727_s0, %s728_s22  }
  0x39   :  { %710 = dma.done.wait [#allocation3], 128  }
  0x3a   :  { %711 = vsyncadd [#allocation3], 4294967168 }
  0x3b   :  { %712 = dma.done.wait [#allocation6], 1152  }
  0x3c   :  { %713 = vsyncadd [#allocation6], 4294966144 }
  0x3d   :  { %714 = dma.done.wait [#allocation9], 2048  }
  0x3e   :  { %715 = vsyncadd [#allocation9], 4294965248  ;;  %v729_v0 = vmov 0.0   ;;  %v95_v1 = vld [vmem:[#allocation7 + $0x28] sm:$0xff]  ;;  %v276_v2 = vld [vmem:[#allocation8 + $0x50] sm:$0xff]  ;;  %vm120_vm0 = vcmask 130048   ;;  %v100_v27 = vlaneseq }
  0x3f   :  { %188 = vmatprep.mubr.f32.mxu1 %v729_v0  ;;  %346 = vmatprep.mubr.f32.mxu0 %v729_v0  ;;  %v94_v3 = vld [vmem:[#allocation7 + $0x20] sm:$0xff]  ;;  %v275_v4 = vld [vmem:[#allocation8 + $0x48] sm:$0xff]  ;;  %v273_v6 = vld [vmem:[#allocation8 + $0x38] sm:$0xff]  ;;  %vm278_vm1 = vcmask 261120   ;;  %vm730_vm2 = vmmov 0  }
  0x40   :  { %152 = vmatprep.subr.mxu1 %v95_v1  ;;  %306 = vmatprep.subr.mxu0 %v276_v2  ;;  %v91_v5 = vld [vmem:[#allocation7 + $0x8] sm:$0xff]  ;;  %v90_v7 = vld [vmem:[#allocation7] sm:$0xff]  ;;  %v272_v8 = vld [vmem:[#allocation8 + $0x30] sm:$0xff]  ;;  %v101_v28 = vshrl.u32 %v100_v27, 7 }
  0x41   :  { %153 = vmatpush1.msra.mxu1 %v94_v3  ;;  %307 = vmatpush1.msra.mxu0 %v275_v4  ;;  %v88_v9 = vld [vmem:[#allocation2] sm:$0xff]  ;;  %v270_v10 = vld [vmem:[#allocation8 + $0x20] sm:$0xff]  ;;  %v269_v11 = vld [vmem:[#allocation8 + $0x18] sm:$0xff] }
  0x42   :  { %154 = vmatprep.subr.mxu1 %v91_v5  ;;  %308 = vmatprep.subr.mxu0 %v273_v6  ;;  %v267_v12 = vld [vmem:[#allocation8 + $0x8] sm:$0xff]  ;;  %v266_v13 = vld [vmem:[#allocation8] sm:$0xff]  ;;  %v785_v14 = vld [vmem:[#allocation5] sm:$0xff]  ;;  %v102_v29 = vsub.s32 0, %v101_v28  ;;  %v110_v38 = vsub.s32 2, %v101_v28  ;;  %v106_v47 = vsub.s32 1, %v101_v28 }
  0x43   :  { %155 = vmatpush1.msra.mxu1 %v90_v7  ;;  %309 = vmatpush1.msra.mxu0 %v272_v8  ;;  %v97_v15 = vld [vmem:[#allocation7 + $0x38] sm:$0xff]  ;;  %v96_v16 = vld [vmem:[#allocation7 + $0x30] sm:$0xff]  ;;  %v274_v20 = vld [vmem:[#allocation8 + $0x40] sm:$0xff]  ;;  %v114_v49 = vsub.s32 3, %v101_v28 }
  0x44   :  { %531 = vmatmul.mubr.msk.f32.vlgmr.msra.gmra.mxu1 %vm120_vm0, %v88_v9  ;;  %310 = vmatprep.subr.mxu0 %v270_v10  ;;  %v93_v17 = vld [vmem:[#allocation7 + $0x18] sm:$0xff]  ;;  %v92_v18 = vld [vmem:[#allocation7 + $0x10] sm:$0xff]  ;;  %v271_v23 = vld [vmem:[#allocation8 + $0x28] sm:$0xff] }
  0x45   :  { %311 = vmatpush1.msra.mxu0 %v269_v11  ;;  %259 = vmatprep.mubr.f32.mxu1 %v729_v0  ;;  %v277_v19 = vld [vmem:[#allocation8 + $0x58] sm:$0xff]  ;;  %v428_v22 = vld [vmem:[#allocation10 + $0x10] sm:$0xff]  ;;  %v427_v24 = vld [vmem:[#allocation10 + $0x8] sm:$0xff] }
  0x46   :  { %312 = vmatprep.subr.mxu0 %v267_v12  ;;  %223 = vmatprep.subr.mxu1 %v97_v15  ;;  %v429_v21 = vld [vmem:[#allocation10 + $0x18] sm:$0xff]  ;;  %v268_v25 = vld [vmem:[#allocation8 + $0x10] sm:$0xff]  ;;  %v426_v26 = vld [vmem:[#allocation10] sm:$0xff] }
  0x47   :  { %313 = vmatpush1.msra.mxu0 %v266_v13  ;;  %224 = vmatpush1.msra.mxu1 %v96_v16  ;;  %v98_v30 = vld [vmem:[%s820_s5] sm:$0xf]  ;;  %s731_s5 = smov [#allocation11]  }
  0x48   :  { %533 = vmatmul.mubr.msk.f32.vlgmr.msra.gmra.mxu0 %vm278_vm1, %v785_v14  ;;  %557 = vmatprep.subr.mxu0 %v729_v0  ;;  %v103_v31 = vrot.slane %v98_v30, %v102_v29  ;;  %v111_v41 = vrot.slane %v98_v30, %v110_v38  ;;  %v107_v48 = vrot.slane %v98_v30, %v106_v47  ;;  %s520_s25 = sshll.u32 %s731_s5, 4  ;;  %s521_s25 = int_to_ptr.vmem [resolvable:$true] %s520_s25 }
  0x49   :  { %225 = vmatprep.subr.mxu1 %v93_v17  ;;  %558 = vmatpush3.msra.mxu0 %v429_v21  ;;  %v115_v52 = vrot.slane %v98_v30, %v114_v49  ;;  %s690_s26 = scalar_lea.vmem %s521_s25, 128  ;;  %p695_p12 = scmp.lt.s32.totalorder %s521_s25, %s521_s25 }
  0x4a   :  { %226 = vmatpush1.msra.mxu1 %v92_v18  ;;  %559 = vmatprep.subr.mxu0 %v729_v0  ;;  %p691_p11 = scmp.ne.s32.totalorder %s521_s25, %s690_s26  ;;  %p696_p13 = scmp.lt.s32.totalorder %s690_s26, %s690_s26 }
  0x4b   :  { %546 = vmatprep.subr.mxu1 %v729_v0  ;;  %532 = vmatmul.mubr.msk.f32.vlgmr.msra.gmra.mxu1 %vm120_vm0, %v88_v9 }
  0x4c   :  { %547 = vmatpush3.msra.mxu1 %v277_v19  ;;  %554 = vmatprep.mubr.msk.f32.mxu1 %vm730_vm2, %v729_v0  ;;  %p697_p0 = por %p696_p13, %p695_p12 }
  0x4d   :  { %548 = vmatprep.subr.mxu1 %v729_v0  ;;  %560 = vmatpush3.msra.mxu0 %v428_v22 }
  0x4e   :  { %549 = vmatpush3.msra.mxu1 %v274_v20  ;;  %561 = vmatprep.subr.mxu0 %v729_v0  ;;  %p698_p1 = pnand %p697_p0, %p691_p11 }
  0x4f   :  { %550 = vmatprep.subr.mxu1 %v729_v0  ;;  %562 = vmatpush3.msra.mxu0 %v427_v24 }
  0x50   :  { %551 = vmatpush3.msra.mxu1 %v271_v23  ;;  %563 = vmatprep.subr.mxu0 %v729_v0 }
  0x51   :  { %552 = vmatprep.subr.mxu1 %v729_v0  ;;  %564 = vmatpush3.msra.mxu0 %v426_v26 }
  0x52   :  { %553 = vmatpush3.msra.mxu1 %v268_v25  ;;  %565 = vmatprep.mubr.msk.f32.mxu0 %vm730_vm2, %v729_v0 }
  0x53   :  { %555 = vmatmul.mubr.msk.f32.vlgmr.msra.gmra.mxu1 %vm278_vm1, %v785_v14 }
 0x104   :  { %v190_v32 = vpop.f32.mrf.mxu1 }
 0x105   :  { %v191_v33 = vadd.f32 %v190_v32, %v103_v31 }
 0x106   :  { %v192_v39 = vpop.f32.mrf.mxu1 }
 0x107   :  { %v193_v51 = vadd.f32 %v192_v39, %v107_v48 }
 0x108   :  { %v348_v34 = vpop.f32.mrf.mxu0 }
 0x109   :  { %v423_v35 = vadd.f32 %v348_v34, %v191_v33 }
 0x10a   :  { %v350_v50 = vpop.f32.mrf.mxu0 }
 0x10b   :  { %582 = vtanh.f32 %v423_v35  ;;  %v261_v40 = vpop.f32.mrf.mxu1  ;;  %v503_v53 = vadd.f32 %v350_v50, %v193_v51 }
 0x10c   :  { %v262_v43 = vadd.f32 %v261_v40, %v111_v41 }
 0x10d   :  { %v263_v42 = vpop.f32.mrf.mxu1  ;;  %584 = vtanh.f32 %v503_v53 }
 0x10e   :  { %v264_v54 = vadd.f32 %v263_v42, %v115_v52 }
 0x113   :  { %v419_v44 = vpop.f32.mrf.mxu1 }
 0x114   :  { %v505_v45 = vadd.f32 %v419_v44, %v262_v43 }
 0x115   :  { %v556_v46 = vpop.f32.mrf.mxu1 }
 0x116   :  { %586 = vtanh.f32 %v505_v45 }
 0x118   :  { %v583_v36 = vpop.eup %582 }
 0x119   :  { %v425_v37 = vmul.f32 %v583_v36, %v785_v14 }
 0x11a   :  { %v585_v58 = vpop.eup %584 }
 0x11b   :  { %566 = vmatmul.mubr.msk.f32.vlgmr.msra.gmra.mxu0 %vm278_vm1, %v425_v37  ;;  %v511_v63 = vmul.f32 %v585_v58, %v785_v14 }
 0x123   :  { %v587_v59 = vpop.eup %586 }
 0x1db   :  { %v499_v55 = vpop.f32.mrf.mxu0 }
 0x1dc   :  { %v507_v56 = vadd.f32 %v499_v55, %v264_v54 }
 0x1dd   :  { %v567_v57 = vpop.f32.mrf.mxu0 }
 0x1de   :  { %588 = vtanh.f32 %v507_v56 }
 0x1eb   :  { %v589_v60 = vpop.eup %588 }
 0x1ec   :  { %v509_v61 = vmul.f32 %v589_v60, %v587_v59 }
 0x1ee   :  { %v510_v62 = vsub.f32 %v589_v60, %v509_v61 }
 0x1f0   :  { %v512_v0 = vadd.f32 %v511_v63, %v510_v62 }
 0x1f2   :  { %513 = vst.msk [vmem:[#allocation11] sm:$0xff] %vm278_vm1, %v512_v0 }
 0x1f3   :  { %701 = shalt.err (!%p698_p1)
}
 0x1f4   :  { %523 = dma.vmem_to_hbm [thread:$0]  %s521_s25, 128, %s821_s6, [#allocation4]  }
 0x1f5   :  { %716 = dma.done.wait [#allocation4], 128  }
 0x1f6   :  { %717 = vsyncadd [#allocation4], 4294967168 }
 0x1f7   :  { %527 = vsyncpa [#allocation3], 1 }
 0x1f8   :  { %528 = vsyncpa [#allocation6], 1 }
 0x1f9   :  { %529 = vsyncpa [#allocation9], 1 }
 0x1fa   :  { %530 = vsyncpa [#allocation4], 1 }

// kernel: tpu_custom_call.1
= control target key start
LH: loop header
LB: loop body
LE: loop exit
PB: predicated region body
PF: predicated region fallthrough
CT: control target
= control target key end

     0   :  { %11 = vsyncpa [#allocation3], 0  ;;  %s815_s0 = inlined_call_operand.hbm [shape: f32[8,16], index: 0, kind: input, shape index: {}]   ;;  %s816_s1 = inlined_call_operand.hbm [shape: f32[8,32], index: 1, kind: input, shape index: {}]   ;;  %s817_s2 = inlined_call_operand.hbm [shape: f32[16,512], index: 2, kind: input, shape index: {}]   ;;  %s818_s3 = inlined_call_operand.hbm [shape: f32[32,384], index: 3, kind: input, shape index: {}]   ;;  %s819_s4 = inlined_call_operand.hbm [shape: f32[32,128], index: 4, kind: input, shape index: {}]   ;;  %s820_s5 = inlined_call_operand.vmem [shape: f32[1,512], index: 5, kind: input, shape index: {}]   ;;  %s821_s6 = inlined_call_operand.hbm [shape: f32[8,32], index: 6, kind: output, shape index: {}]  }
   0x1   :  { %12 = vsyncpa [#allocation6], 0 }
   0x2   :  { %13 = vsyncpa [#allocation9], 0 }
   0x3   :  { %14 = vsyncpa [#allocation4], 0  ;;  %s718_s21 = smov [#allocation5]   ;;  %s719_s23 = smov [#allocation8]  }
   0x4   :  { %s31_s22 = sshll.u32 %s718_s21, 4  ;;  %s52_s24 = sshll.u32 %s719_s23, 4  ;;  %s32_s22 = int_to_ptr.vmem [resolvable:$true] %s31_s22  ;;  %s53_s24 = int_to_ptr.vmem [resolvable:$true] %s52_s24 }
   0x5   :  { %s598_s25 = scalar_lea.vmem %s32_s22, 128  ;;  %p603_p1 = scmp.lt.s32.totalorder %s32_s22, %s32_s22 }
   0x6   :  { %p599_p0 = scmp.ne.s32.totalorder %s32_s22, %s598_s25  ;;  %p604_p2 = scmp.lt.s32.totalorder %s598_s25, %s598_s25 }
   0x8   :  { %p605_p3 = por %p604_p2, %p603_p1 }
   0xa   :  { %p606_p4 = pnand %p605_p3, %p599_p0 }
   0xc   :  { %609 = shalt.err (!%p606_p4)
}
   0xd   :  { %34 = dma.hbm_to_vmem [thread:$0]  %s816_s1, 128, %s32_s22, [#allocation6]  }
   0xe   :  { %s618_s28 = scalar_lea.vmem %s53_s24, 1536  ;;  %p623_p6 = scmp.lt.s32.totalorder %s53_s24, %s53_s24 }
   0xf   :  { %p619_p5 = scmp.ne.s32.totalorder %s53_s24, %s618_s28  ;;  %p624_p7 = scmp.lt.s32.totalorder %s618_s28, %s618_s28 }
  0x11   :  { %p625_p8 = por %p624_p7, %p623_p6 }
  0x13   :  { %p626_p9 = pnand %p625_p8, %p619_p5 }
  0x15   :  { %629 = shalt.err (!%p626_p9)
}
  0x16   :  { %s720_s29 = smov 384   ;;  %s721_s30 = smov 24  }
  0x17   :  { %58 = dma.hbm_to_vmem [thread:$0]  %s818_s3, 1536, %s53_s24, [#allocation9], %s720_s29, %s720_s29, %s721_s30  }
  0x18   :  { %s722_s9 = smov [#allocation2]   ;;  %s723_s11 = smov [#allocation7]  }
  0x19   :  { %s21_s10 = sshll.u32 %s722_s9, 4  ;;  %s40_s12 = sshll.u32 %s723_s11, 4  ;;  %s22_s10 = int_to_ptr.vmem [resolvable:$true] %s21_s10  ;;  %s41_s12 = int_to_ptr.vmem [resolvable:$true] %s40_s12 }
  0x1a   :  { %s638_s1 = scalar_lea.vmem %s22_s10, 128  ;;  %p643_p11 = scmp.lt.s32.totalorder %s22_s10, %s22_s10 }
  0x1b   :  { %p639_p10 = scmp.ne.s32.totalorder %s22_s10, %s638_s1  ;;  %p644_p12 = scmp.lt.s32.totalorder %s638_s1, %s638_s1 }
  0x1d   :  { %p645_p13 = por %p644_p12, %p643_p11 }
  0x1f   :  { %p646_p0 = pnand %p645_p13, %p639_p10 }
  0x21   :  { %649 = shalt.err (!%p646_p0)
}
  0x22   :  { %24 = dma.hbm_to_vmem [thread:$0]  %s815_s0, 128, %s22_s10, [#allocation3]  }
  0x23   :  { %s658_s15 = scalar_lea.vmem %s41_s12, 1024  ;;  %p663_p2 = scmp.lt.s32.totalorder %s41_s12, %s41_s12 }
  0x24   :  { %p659_p1 = scmp.ne.s32.totalorder %s41_s12, %s658_s15  ;;  %p664_p3 = scmp.lt.s32.totalorder %s658_s15, %s658_s15 }
  0x26   :  { %p665_p4 = por %p664_p3, %p663_p2 }
  0x28   :  { %p666_p5 = pnand %p665_p4, %p659_p1 }
  0x2a   :  { %669 = shalt.err (!%p666_p5)
}
  0x2b   :  { %s724_s3 = smov 512   ;;  %s725_s16 = smov 32  }
  0x2c   :  { %46 = dma.hbm_to_vmem [thread:$0]  %s817_s2, 1024, %s41_s12, [#allocation6], %s724_s3, %s724_s3, %s725_s16  }
  0x2d   :  { %s726_s19 = smov [#allocation10]  }
  0x2e   :  { %s64_s20 = sshll.u32 %s726_s19, 4  ;;  %s65_s20 = int_to_ptr.vmem [resolvable:$true] %s64_s20 }
  0x2f   :  { %s678_s21 = scalar_lea.vmem %s65_s20, 512  ;;  %p683_p7 = scmp.lt.s32.totalorder %s65_s20, %s65_s20 }
  0x30   :  { %p679_p6 = scmp.ne.s32.totalorder %s65_s20, %s678_s21  ;;  %p684_p8 = scmp.lt.s32.totalorder %s678_s21, %s678_s21 }
  0x32   :  { %p685_p9 = por %p684_p8, %p683_p7 }
  0x34   :  { %p686_p10 = pnand %p685_p9, %p679_p6 }
  0x36   :  { %689 = shalt.err (!%p686_p10)
}
  0x37   :  { %s727_s0 = smov 128   ;;  %s728_s22 = smov 8  }
  0x38   :  { %70 = dma.hbm_to_vmem [thread:$0]  %s819_s4, 512, %s65_s20, [#allocation9], %s727_s0, %s727_s0, %s728_s22  }
  0x39   :  { %710 = dma.done.wait [#allocation3], 128  }
  0x3a   :  { %711 = vsyncadd [#allocation3], 4294967168 }
  0x3b   :  { %712 = dma.done.wait [#allocation6], 1152  }
  0x3c   :  { %713 = vsyncadd [#allocation6], 4294966144 }
  0x3d   :  { %714 = dma.done.wait [#allocation9], 2048  }
  0x3e   :  { %715 = vsyncadd [#allocation9], 4294965248  ;;  %v729_v0 = vmov 0.0   ;;  %v95_v1 = vld [vmem:[#allocation7 + $0x28] sm:$0xff]  ;;  %v276_v2 = vld [vmem:[#allocation8 + $0x50] sm:$0xff]  ;;  %vm120_vm0 = vcmask 130048   ;;  %v100_v27 = vlaneseq }
  0x3f   :  { %188 = vmatprep.mubr.f32.mxu1 %v729_v0  ;;  %346 = vmatprep.mubr.f32.mxu0 %v729_v0  ;;  %v94_v3 = vld [vmem:[#allocation7 + $0x20] sm:$0xff]  ;;  %v275_v4 = vld [vmem:[#allocation8 + $0x48] sm:$0xff]  ;;  %v273_v6 = vld [vmem:[#allocation8 + $0x38] sm:$0xff]  ;;  %vm278_vm1 = vcmask 261120   ;;  %vm730_vm2 = vmmov 0  }
  0x40   :  { %152 = vmatprep.subr.mxu1 %v95_v1  ;;  %306 = vmatprep.subr.mxu0 %v276_v2  ;;  %v91_v5 = vld [vmem:[#allocation7 + $0x8] sm:$0xff]  ;;  %v90_v7 = vld [vmem:[#allocation7] sm:$0xff]  ;;  %v272_v8 = vld [vmem:[#allocation8 + $0x30] sm:$0xff]  ;;  %v101_v28 = vshrl.u32 %v100_v27, 7 }
  0x41   :  { %153 = vmatpush1.msra.mxu1 %v94_v3  ;;  %307 = vmatpush1.msra.mxu0 %v275_v4  ;;  %v88_v9 = vld [vmem:[#allocation2] sm:$0xff]  ;;  %v270_v10 = vld [vmem:[#allocation8 + $0x20] sm:$0xff]  ;;  %v269_v11 = vld [vmem:[#allocation8 + $0x18] sm:$0xff] }
  0x42   :  { %154 = vmatprep.subr.mxu1 %v91_v5  ;;  %308 = vmatprep.subr.mxu0 %v273_v6  ;;  %v267_v12 = vld [vmem:[#allocation8 + $0x8] sm:$0xff]  ;;  %v266_v13 = vld [vmem:[#allocation8] sm:$0xff]  ;;  %v785_v14 = vld [vmem:[#allocation5] sm:$0xff]  ;;  %v102_v29 = vsub.s32 0, %v101_v28  ;;  %v110_v38 = vsub.s32 2, %v101_v28  ;;  %v106_v47 = vsub.s32 1, %v101_v28 }
  0x43   :  { %155 = vmatpush1.msra.mxu1 %v90_v7  ;;  %309 = vmatpush1.msra.mxu0 %v272_v8  ;;  %v97_v15 = vld [vmem:[#allocation7 + $0x38] sm:$0xff]  ;;  %v96_v16 = vld [vmem:[#allocation7 + $0x30] sm:$0xff]  ;;  %v274_v20 = vld [vmem:[#allocation8 + $0x40] sm:$0xff]  ;;  %v114_v49 = vsub.s32 3, %v101_v28 }
  0x44   :  { %531 = vmatmul.mubr.msk.f32.vlgmr.msra.gmra.mxu1 %vm120_vm0, %v88_v9  ;;  %310 = vmatprep.subr.mxu0 %v270_v10  ;;  %v93_v17 = vld [vmem:[#allocation7 + $0x18] sm:$0xff]  ;;  %v92_v18 = vld [vmem:[#allocation7 + $0x10] sm:$0xff]  ;;  %v271_v23 = vld [vmem:[#allocation8 + $0x28] sm:$0xff] }
  0x45   :  { %311 = vmatpush1.msra.mxu0 %v269_v11  ;;  %259 = vmatprep.mubr.f32.mxu1 %v729_v0  ;;  %v277_v19 = vld [vmem:[#allocation8 + $0x58] sm:$0xff]  ;;  %v428_v22 = vld [vmem:[#allocation10 + $0x10] sm:$0xff]  ;;  %v427_v24 = vld [vmem:[#allocation10 + $0x8] sm:$0xff] }
  0x46   :  { %312 = vmatprep.subr.mxu0 %v267_v12  ;;  %223 = vmatprep.subr.mxu1 %v97_v15  ;;  %v429_v21 = vld [vmem:[#allocation10 + $0x18] sm:$0xff]  ;;  %v268_v25 = vld [vmem:[#allocation8 + $0x10] sm:$0xff]  ;;  %v426_v26 = vld [vmem:[#allocation10] sm:$0xff] }
  0x47   :  { %313 = vmatpush1.msra.mxu0 %v266_v13  ;;  %224 = vmatpush1.msra.mxu1 %v96_v16  ;;  %v98_v30 = vld [vmem:[%s820_s5] sm:$0xf]  ;;  %s731_s5 = smov [#allocation11]  }
  0x48   :  { %533 = vmatmul.mubr.msk.f32.vlgmr.msra.gmra.mxu0 %vm278_vm1, %v785_v14  ;;  %557 = vmatprep.subr.mxu0 %v729_v0  ;;  %v103_v31 = vrot.slane %v98_v30, %v102_v29  ;;  %v111_v41 = vrot.slane %v98_v30, %v110_v38  ;;  %v107_v48 = vrot.slane %v98_v30, %v106_v47  ;;  %s520_s25 = sshll.u32 %s731_s5, 4  ;;  %s521_s25 = int_to_ptr.vmem [resolvable:$true] %s520_s25 }
  0x49   :  { %225 = vmatprep.subr.mxu1 %v93_v17  ;;  %558 = vmatpush3.msra.mxu0 %v429_v21  ;;  %v115_v52 = vrot.slane %v98_v30, %v114_v49  ;;  %s690_s26 = scalar_lea.vmem %s521_s25, 128  ;;  %p695_p12 = scmp.lt.s32.totalorder %s521_s25, %s521_s25 }
  0x4a   :  { %226 = vmatpush1.msra.mxu1 %v92_v18  ;;  %559 = vmatprep.subr.mxu0 %v729_v0  ;;  %p691_p11 = scmp.ne.s32.totalorder %s521_s25, %s690_s26  ;;  %p696_p13 = scmp.lt.s32.totalorder %s690_s26, %s690_s26 }
  0x4b   :  { %546 = vmatprep.subr.mxu1 %v729_v0  ;;  %532 = vmatmul.mubr.msk.f32.vlgmr.msra.gmra.mxu1 %vm120_vm0, %v88_v9 }
  0x4c   :  { %547 = vmatpush3.msra.mxu1 %v277_v19  ;;  %554 = vmatprep.mubr.msk.f32.mxu1 %vm730_vm2, %v729_v0  ;;  %p697_p0 = por %p696_p13, %p695_p12 }
  0x4d   :  { %548 = vmatprep.subr.mxu1 %v729_v0  ;;  %560 = vmatpush3.msra.mxu0 %v428_v22 }
  0x4e   :  { %549 = vmatpush3.msra.mxu1 %v274_v20  ;;  %561 = vmatprep.subr.mxu0 %v729_v0  ;;  %p698_p1 = pnand %p697_p0, %p691_p11 }
  0x4f   :  { %550 = vmatprep.subr.mxu1 %v729_v0  ;;  %562 = vmatpush3.msra.mxu0 %v427_v24 }
  0x50   :  { %551 = vmatpush3.msra.mxu1 %v271_v23  ;;  %563 = vmatprep.subr.mxu0 %v729_v0 }
  0x51   :  { %552 = vmatprep.subr.mxu1 %v729_v0  ;;  %564 = vmatpush3.msra.mxu0 %v426_v26 }
  0x52   :  { %553 = vmatpush3.msra.mxu1 %v268_v25  ;;  %565 = vmatprep.mubr.msk.f32.mxu0 %vm730_vm2, %v729_v0 }
  0x53   :  { %555 = vmatmul.mubr.msk.f32.vlgmr.msra.gmra.mxu1 %vm278_vm1, %v785_v14 }
 0x104   :  { %v190_v32 = vpop.f32.mrf.mxu1 }
 0x105   :  { %v191_v33 = vadd.f32 %v190_v32, %v103_v31 }
 0x106   :  { %v192_v39 = vpop.f32.mrf.mxu1 }
 0x107   :  { %v193_v51 = vadd.f32 %v192_v39, %v107_v48 }
 0x108   :  { %v348_v34 = vpop.f32.mrf.mxu0 }
 0x109   :  { %v423_v35 = vadd.f32 %v348_v34, %v191_v33 }
 0x10a   :  { %v350_v50 = vpop.f32.mrf.mxu0 }
 0x10b   :  { %582 = vtanh.f32 %v423_v35  ;;  %v261_v40 = vpop.f32.mrf.mxu1  ;;  %v503_v53 = vadd.f32 %v350_v50, %v193_v51 }
 0x10c   :  { %v262_v43 = vadd.f32 %v261_v40, %v111_v41 }
 0x10d   :  { %v263_v42 = vpop.f32.mrf.mxu1  ;;  %584 = vtanh.f32 %v503_v53 }
 0x10e   :  { %v264_v54 = vadd.f32 %v263_v42, %v115_v52 }
 0x113   :  { %v419_v44 = vpop.f32.mrf.mxu1 }
 0x114   :  { %v505_v45 = vadd.f32 %v419_v44, %v262_v43 }
 0x115   :  { %v556_v46 = vpop.f32.mrf.mxu1 }
 0x116   :  { %586 = vtanh.f32 %v505_v45 }
 0x118   :  { %v583_v36 = vpop.eup %582 }
 0x119   :  { %v425_v37 = vmul.f32 %v583_v36, %v785_v14 }
 0x11a   :  { %v585_v58 = vpop.eup %584 }
 0x11b   :  { %566 = vmatmul.mubr.msk.f32.vlgmr.msra.gmra.mxu0 %vm278_vm1, %v425_v37  ;;  %v511_v63 = vmul.f32 %v585_v58, %v785_v14 }
 0x123   :  { %v587_v59 = vpop.eup %586 }
 0x1db   :  { %v499_v55 = vpop.f32.mrf.mxu0 }
 0x1dc   :  { %v507_v56 = vadd.f32 %v499_v55, %v264_v54 }
 0x1dd   :  { %v567_v57 = vpop.f32.mrf.mxu0 }
 0x1de   :  { %588 = vtanh.f32 %v507_v56 }
 0x1eb   :  { %v589_v60 = vpop.eup %588 }
 0x1ec   :  { %v509_v61 = vmul.f32 %v589_v60, %v587_v59 }
 0x1ee   :  { %v510_v62 = vsub.f32 %v589_v60, %v509_v61 }
 0x1f0   :  { %v512_v0 = vadd.f32 %v511_v63, %v510_v62 }
 0x1f2   :  { %513 = vst.msk [vmem:[#allocation11] sm:$0xff] %vm278_vm1, %v512_v0 }
 0x1f3   :  { %701 = shalt.err (!%p698_p1)
}
 0x1f4   :  { %523 = dma.vmem_to_hbm [thread:$0]  %s521_s25, 128, %s821_s6, [#allocation4]  }
 0x1f5   :  { %716 = dma.done.wait [#allocation4], 128  }
 0x1f6   :  { %717 = vsyncadd [#allocation4], 4294967168 }
 0x1f7   :  { %527 = vsyncpa [#allocation3], 1 }
 0x1f8   :  { %528 = vsyncpa [#allocation6], 1 }
 0x1f9   :  { %529 = vsyncpa [#allocation9], 1 }
 0x1fa   :  { %530 = vsyncpa [#allocation4], 1 }

</bundles_post_ra>
